<compile_context>
chip_gen: v6e
topology: v6e:2x2x1
jax: 0.10.0
libtpu: 0.0.40
codegen_flags: <defaults>
</compile_context>

<pallas_src>
import functools

import jax
import jax.numpy as jnp
from jax.experimental import pallas as pl
from jax.experimental.pallas import tpu as pltpu


def _round_up(x: int, m: int) -> int:
    return ((x + m - 1) // m) * m


def _vmem_capacity_bytes() -> int:
    """Physical VMEM per TensorCore, best effort (128 MiB on v5e/v6e, 64 MiB on v7x)."""
    try:
        cap = getattr(pltpu.get_tpu_info(), "vmem_capacity_bytes", None)
        if cap:
            return int(cap)
    except Exception:
        pass
    try:
        kind = jax.devices()[0].device_kind.lower()
    except Exception:
        kind = ""
    if "v7" in kind or "7x" in kind:
        return 64 * 1024 * 1024
    return 128 * 1024 * 1024


def _vmem_per_step_bytes(tm, C, H, x_bytes, o_bytes, w_bytes, param_buffers):
    """Rough per-grid-step VMEM footprint estimate."""
    tile_io = 2 * tm * C * x_bytes                 # x tile (double-buffered)
    tile_io += 2 * tm * (C + H) * o_bytes          # norm / proj output tiles (double-buffered)
    params = param_buffers * (C * H * w_bytes + (2 * C + H) * 4)
    temps = tm * (2 * C + 2 * H) * 4 + tm * C * w_bytes  # f32 intermediates + bf16 matmul LHS
    return tile_io + params + temps


def _feature_projection_kernel(x_ref, gamma_ref, beta_ref, w_ref, b_ref,
                               proj_ref, norm_ref, *, eps):
    # x_ref:      (TM, C)  tile of rows
    # gamma/beta: (1, C)   f32
    # w_ref:      (C, H)   bf16 (pre-cast in wrapper)
    # b_ref:      (1, H)   f32
    x = x_ref[...].astype(jnp.float32)
    c = x.shape[-1]
    inv_c = jnp.float32(1.0 / c)

    # LayerNorm statistics: mean, then CENTERED second moment (no cancellation risk).
    mean = jnp.sum(x, axis=-1, keepdims=True) * inv_c
    xc = x - mean
    var = jnp.sum(xc * xc, axis=-1, keepdims=True) * inv_c
    inv_std = jax.lax.rsqrt(var + eps)

    norm = xc * inv_std * gamma_ref[...] + beta_ref[...]
    norm_ref[...] = norm.astype(norm_ref.dtype)

    # Linear projection on the MXU: bf16 operands, f32 accumulation.
    proj = jnp.dot(norm.astype(w_ref.dtype), w_ref[...],
                   preferred_element_type=jnp.float32)
    proj = proj + b_ref[...]

    # TODO(synk): nn.Dropout(feat_proj_dropout) is identity in eval mode; training-mode dropout
    # (pltpu.prng_seed + stateful_bernoulli) is intentionally not implemented here.
    proj_ref[...] = proj.astype(proj_ref.dtype)


def feature_projection(hidden_states, gamma, beta, weight, bias, *,
                       eps=1e-5, tile_rows=1024, matmul_dtype=jnp.bfloat16,
                       out_dtype=None, single_buffer_params=True):
    """hidden_states: (B, S, C); weight: (C, H) (= PyTorch W^T); returns (proj (B,S,H), norm (B,S,C))."""
    B, S, C = hidden_states.shape
    Cw, H = weight.shape
    assert Cw == C, f"weight expected ({C}, H), got {weight.shape}"

    rows = B * S
    # NOTE: downstream consumers that tolerate bf16 outputs can pass out_dtype=jnp.bfloat16 to
    # cut output writeback (the dominant HBM traffic) roughly in half for f32 inputs.
    out_dtype = hidden_states.dtype if out_dtype is None else out_dtype

    x_bytes = jnp.dtype(hidden_states.dtype).itemsize
    o_bytes = jnp.dtype(out_dtype).itemsize
    w_bytes = jnp.dtype(matmul_dtype).itemsize
    pbufs = 1 if single_buffer_params else 2

    vmem_budget = int(_vmem_capacity_bytes() * 3 // 4)   # leave compiler/scratch headroom

    # --- row tile selection -------------------------------------------------
    tm = max(8, min(_round_up(tile_rows, 8), _round_up(rows, 8)))
    # Shrink until the per-step footprint fits the VMEM budget.
    while tm > 8 and _vmem_per_step_bytes(tm, C, H, x_bytes, o_bytes, w_bytes, pbufs) > vmem_budget:
        tm = max(8, _round_up(tm // 2, 8))
    # Guarantee >= 2 grid steps for megacore row-sharding when there is enough work.
    if pl.cdiv(rows, tm) < 2 and rows >= 512:
        tm = max(8, _round_up(pl.cdiv(rows, 2), 8))
    # Rebalance so the final (masked) tile is not mostly padding.
    nsteps = pl.cdiv(rows, tm)
    tm = max(8, _round_up(pl.cdiv(rows, nsteps), 8))
    grid = (pl.cdiv(rows, tm),)

    # --- operands (no full-array pad copy; Pallas masks the tail block) -----
    x2d = hidden_states.reshape(rows, C)
    gamma2d = gamma.reshape(1, C).astype(jnp.float32)
    beta2d = beta.reshape(1, C).astype(jnp.float32)
    w = weight.astype(matmul_dtype)            # bf16 weights for the MXU
    bias2d = bias.reshape(1, H).astype(jnp.float32)

    # --- compiler params / cost estimate ------------------------------------
    vmem_est = _vmem_per_step_bytes(tm, C, H, x_bytes, o_bytes, w_bytes, pbufs)
    cp_kwargs = dict(dimension_semantics=("parallel",))
    if vmem_est > 16 * 1024 * 1024:
        cp_kwargs["vmem_limit_bytes"] = min(max(int(vmem_est * 5 // 4), 32 * 1024 * 1024),
                                            vmem_budget)
    compiler_params = pltpu.CompilerParams(**cp_kwargs)

    cost = pl.CostEstimate(
        flops=2 * rows * C * H + 8 * rows * C,          # matmul + LayerNorm arithmetic
        transcendentals=rows,                            # one rsqrt per row
        bytes_accessed=(rows * C * x_bytes               # read x (no pad copy anymore)
                        + rows * C * o_bytes             # write norm
                        + rows * H * o_bytes             # write proj
                        + C * H * w_bytes                # weight read once
                        + (2 * C + H) * 4),              # gamma/beta/bias
    )

    kernel = functools.partial(_feature_projection_kernel, eps=float(eps))

    def _run(use_single_buffer):
        param_kwargs = {"pipeline_mode": pl.Buffered(1)} if use_single_buffer else {}
        return pl.pallas_call(
            kernel,
            out_shape=(
                jax.ShapeDtypeStruct((rows, H), out_dtype),
                jax.ShapeDtypeStruct((rows, C), out_dtype),
            ),
            grid_spec=pltpu.PrefetchScalarGridSpec(
                num_scalar_prefetch=0,
                grid=grid,
                in_specs=[
                    pl.BlockSpec((tm, C), lambda i: (i, 0)),                  # x row tile
                    pl.BlockSpec((1, C), lambda i: (0, 0), **param_kwargs),   # gamma
                    pl.BlockSpec((1, C), lambda i: (0, 0), **param_kwargs),   # beta
                    pl.BlockSpec((C, H), lambda i: (0, 0), **param_kwargs),   # weight (bf16)
                    pl.BlockSpec((1, H), lambda i: (0, 0), **param_kwargs),   # bias
                ],
                out_specs=[
                    pl.BlockSpec((tm, H), lambda i: (i, 0)),                  # proj
                    pl.BlockSpec((tm, C), lambda i: (i, 0)),                  # norm
                ],
            ),
            compiler_params=compiler_params,
            cost_estimate=cost,
        )(x2d, gamma2d, beta2d, w, bias2d)

    if single_buffer_params:
        try:
            proj, norm = _run(True)
        except Exception:
            # Fallback: default double-buffered grid-invariant operands.
            proj, norm = _run(False)
    else:
        proj, norm = _run(False)

    return proj.reshape(B, S, H), norm.reshape(B, S, C)


if __name__ == "__main__":
    # Small synthetic config: conv_dim=128, hidden_size=256, layer_norm_eps=1e-5.
    eps = 1e-5
    C, H = 128, 256

    key = jax.random.PRNGKey(0)
    kx, kg, kb, kw, kbias, kx2 = jax.random.split(key, 6)

    gamma = 1.0 + 0.1 * jax.random.normal(kg, (C,), dtype=jnp.float32)
    beta = 0.1 * jax.random.normal(kb, (C,), dtype=jnp.float32)
    # PyTorch Linear stores (H, C); we keep it transposed as (C, H).
    weight = 0.02 * jax.random.normal(kw, (C, H), dtype=jnp.float32)
    bias = 0.01 * jax.random.normal(kbias, (H,), dtype=jnp.float32)

    def reference(x):
        mean = jnp.mean(x, axis=-1, keepdims=True)
        var = jnp.mean((x - mean) ** 2, axis=-1, keepdims=True)
        norm = (x - mean) * jax.lax.rsqrt(var + eps) * gamma + beta
        proj = jnp.einsum("bsc,ch->bsh", norm, weight) + bias
        return proj, norm

    # Case 1: rows divisible by the tile (B*S = 16).
    x = jax.random.normal(kx, (2, 8, C), dtype=jnp.float32)
    proj, norm = feature_projection(x, gamma, beta, weight, bias, eps=eps)
    jax.block_until_ready((proj, norm))
    proj_ref, norm_ref = reference(x)
    assert jnp.allclose(norm, norm_ref, atol=1e-5, rtol=1e-5), "norm mismatch (case 1)"
    assert jnp.allclose(proj, proj_ref, atol=2e-2, rtol=2e-2), "proj mismatch (case 1)"

    # Case 2: rows = 15 not divisible by the tile -> masked tail block, no pad copy.
    x2 = jax.random.normal(kx2, (3, 5, C), dtype=jnp.float32)
    proj2, norm2 = feature_projection(x2, gamma, beta, weight, bias, eps=eps, tile_rows=8)
    jax.block_until_ready((proj2, norm2))
    proj2_ref, norm2_ref = reference(x2)
    assert jnp.allclose(norm2, norm2_ref, atol=1e-5, rtol=1e-5), "norm mismatch (case 2)"
    assert jnp.allclose(proj2, proj2_ref, atol=2e-2, rtol=2e-2), "proj mismatch (case 2)"

    print("KERNEL_OK")
</pallas_src>

<mosaic_0001>
module attributes {stable_mosaic.version = 11 : i64} {
  func.func @_feature_projection_kernel(%arg0: i32, %arg1: memref<16x128xf32, #tpu.memory_space<vmem>>, %arg2: memref<1x128xf32, #tpu.memory_space<vmem>>, %arg3: memref<1x128xf32, #tpu.memory_space<vmem>>, %arg4: memref<128x256xbf16, #tpu.memory_space<vmem>>, %arg5: memref<1x256xf32, #tpu.memory_space<vmem>>, %arg6: memref<16x256xf32, #tpu.memory_space<vmem>>, %arg7: memref<16x128xf32, #tpu.memory_space<vmem>>) attributes {dimension_semantics = [#tpu.dimension_semantics<parallel>], iteration_bounds = array<i64: 1>, scalar_prefetch = 0 : i64, scratch_operands = 0 : i64, tpu.core_type = #tpu.core_type<tc>, window_params = [{transform_indices = @transform_0, window_bounds = array<i64: 16, 128>}, {pipeline_mode = #tpu.pipeline_mode<synchronous>, transform_indices = @transform_1, window_bounds = array<i64: 1, 128>}, {pipeline_mode = #tpu.pipeline_mode<synchronous>, transform_indices = @transform_2, window_bounds = array<i64: 1, 128>}, {pipeline_mode = #tpu.pipeline_mode<synchronous>, transform_indices = @transform_3, window_bounds = array<i64: 128, 256>}, {pipeline_mode = #tpu.pipeline_mode<synchronous>, transform_indices = @transform_4, window_bounds = array<i64: 1, 256>}, {transform_indices = @transform_5, window_bounds = array<i64: 16, 256>}, {transform_indices = @transform_6, window_bounds = array<i64: 16, 128>}]} {
    %c0 = arith.constant 0 : index
    %c0_0 = arith.constant 0 : index
    %0 = vector.load %arg1[%c0, %c0_0] : memref<16x128xf32, #tpu.memory_space<vmem>>, vector<16x128xf32>
    %cst = arith.constant dense<0.000000e+00> : vector<16xf32>
    %1 = vector.multi_reduction <add>, %0, %cst [1] : vector<16x128xf32> to vector<16xf32>
    %2 = vector.shape_cast %1 : vector<16xf32> to vector<16x1xf32>
    %cst_1 = arith.constant 7.812500e-03 : f32
    %3 = vector.broadcast %cst_1 : f32 to vector<16x1xf32>
    %4 = arith.mulf %2, %3 : vector<16x1xf32>
    %5 = vector.broadcast %4 : vector<16x1xf32> to vector<16x128xf32>
    %6 = arith.subf %0, %5 : vector<16x128xf32>
    %7 = arith.mulf %6, %6 : vector<16x128xf32>
    %cst_2 = arith.constant dense<0.000000e+00> : vector<16xf32>
    %8 = vector.multi_reduction <add>, %7, %cst_2 [1] : vector<16x128xf32> to vector<16xf32>
    %9 = vector.shape_cast %8 : vector<16xf32> to vector<16x1xf32>
    %cst_3 = arith.constant 7.812500e-03 : f32
    %10 = vector.broadcast %cst_3 : f32 to vector<16x1xf32>
    %11 = arith.mulf %9, %10 : vector<16x1xf32>
    %cst_4 = arith.constant 9.99999974E-6 : f32
    %12 = vector.broadcast %cst_4 : f32 to vector<16x1xf32>
    %13 = arith.addf %11, %12 : vector<16x1xf32>
    %14 = math.rsqrt %13 : vector<16x1xf32>
    %15 = vector.broadcast %14 : vector<16x1xf32> to vector<16x128xf32>
    %16 = arith.mulf %6, %15 : vector<16x128xf32>
    %c0_5 = arith.constant 0 : index
    %c0_6 = arith.constant 0 : index
    %17 = vector.load %arg2[%c0_5, %c0_6] : memref<1x128xf32, #tpu.memory_space<vmem>>, vector<1x128xf32>
    %18 = vector.broadcast %17 : vector<1x128xf32> to vector<16x128xf32>
    %19 = arith.mulf %16, %18 : vector<16x128xf32>
    %c0_7 = arith.constant 0 : index
    %c0_8 = arith.constant 0 : index
    %20 = vector.load %arg3[%c0_7, %c0_8] : memref<1x128xf32, #tpu.memory_space<vmem>>, vector<1x128xf32>
    %21 = vector.broadcast %20 : vector<1x128xf32> to vector<16x128xf32>
    %22 = arith.addf %19, %21 : vector<16x128xf32>
    %c0_9 = arith.constant 0 : index
    %c0_10 = arith.constant 0 : index
    %23 = vector.load %arg7[%c0_9, %c0_10] : memref<16x128xf32, #tpu.memory_space<vmem>>, vector<16x128xf32>
    tpu.vector_store %arg7[%c0_9, %c0_10], %22 {strides = array<i32>} : memref<16x128xf32, #tpu.memory_space<vmem>>, vector<16x128xf32>,
    %24 = arith.truncf %22 : vector<16x128xf32> to vector<16x128xbf16>
    %c0_11 = arith.constant 0 : index
    %c0_12 = arith.constant 0 : index
    %25 = vector.load %arg4[%c0_11, %c0_12] : memref<128x256xbf16, #tpu.memory_space<vmem>>, vector<128x256xbf16>
    %cst_13 = arith.constant dense<0.000000e+00> : vector<16x256xf32>
    %26 = tpu.matmul %24, %25, %cst_13 {dimension_numbers = #tpu.dot_dimension_numbers<[1], [0], [0], [1], [0, 0, 1, 1], [], []>} : vector<16x128xbf16>, vector<128x256xbf16>, vector<16x256xf32> -> vector<16x256xf32>
    %c0_14 = arith.constant 0 : index
    %c0_15 = arith.constant 0 : index
    %27 = vector.load %arg5[%c0_14, %c0_15] : memref<1x256xf32, #tpu.memory_space<vmem>>, vector<1x256xf32>
    %28 = vector.broadcast %27 : vector<1x256xf32> to vector<16x256xf32>
    %29 = arith.addf %26, %28 : vector<16x256xf32>
    %c0_16 = arith.constant 0 : index
    %c0_17 = arith.constant 0 : index
    %30 = vector.load %arg6[%c0_16, %c0_17] : memref<16x256xf32, #tpu.memory_space<vmem>>, vector<16x256xf32>
    tpu.vector_store %arg6[%c0_16, %c0_17], %29 {strides = array<i32>} : memref<16x256xf32, #tpu.memory_space<vmem>>, vector<16x256xf32>,
    return
  }
  func.func @transform_0(%arg0: i32) -> (i32, i32) {
    %c0_i32 = arith.constant 0 : i32
    %c0_i32_0 = arith.constant 0 : i32
    return %arg0, %c0_i32 : i32, i32
  }
  func.func @transform_1(%arg0: i32) -> (i32, i32) {
    %c0_i32 = arith.constant 0 : i32
    %c0_i32_0 = arith.constant 0 : i32
    %c0_i32_1 = arith.constant 0 : i32
    return %c0_i32, %c0_i32_0 : i32, i32
  }
  func.func @transform_2(%arg0: i32) -> (i32, i32) {
    %c0_i32 = arith.constant 0 : i32
    %c0_i32_0 = arith.constant 0 : i32
    %c0_i32_1 = arith.constant 0 : i32
    return %c0_i32, %c0_i32_0 : i32, i32
  }
  func.func @transform_3(%arg0: i32) -> (i32, i32) {
    %c0_i32 = arith.constant 0 : i32
    %c0_i32_0 = arith.constant 0 : i32
    %c0_i32_1 = arith.constant 0 : i32
    return %c0_i32, %c0_i32_0 : i32, i32
  }
  func.func @transform_4(%arg0: i32) -> (i32, i32) {
    %c0_i32 = arith.constant 0 : i32
    %c0_i32_0 = arith.constant 0 : i32
    %c0_i32_1 = arith.constant 0 : i32
    return %c0_i32, %c0_i32_0 : i32, i32
  }
  func.func @transform_5(%arg0: i32) -> (i32, i32) {
    %c0_i32 = arith.constant 0 : i32
    %c0_i32_0 = arith.constant 0 : i32
    return %arg0, %c0_i32 : i32, i32
  }
  func.func @transform_6(%arg0: i32) -> (i32, i32) {
    %c0_i32 = arith.constant 0 : i32
    %c0_i32_0 = arith.constant 0 : i32
    return %arg0, %c0_i32 : i32, i32
  }
}

module attributes {stable_mosaic.version = 11 : i64} {
  func.func @_feature_projection_kernel(%arg0: i32, %arg1: memref<16x128xf32, #tpu.memory_space<vmem>>, %arg2: memref<1x128xf32, #tpu.memory_space<vmem>>, %arg3: memref<1x128xf32, #tpu.memory_space<vmem>>, %arg4: memref<128x256xbf16, #tpu.memory_space<vmem>>, %arg5: memref<1x256xf32, #tpu.memory_space<vmem>>, %arg6: memref<16x256xf32, #tpu.memory_space<vmem>>, %arg7: memref<16x128xf32, #tpu.memory_space<vmem>>) attributes {dimension_semantics = [#tpu.dimension_semantics<parallel>], iteration_bounds = array<i64: 1>, scalar_prefetch = 0 : i64, scratch_operands = 0 : i64, tpu.core_type = #tpu.core_type<tc>, window_params = [{transform_indices = @transform_0, window_bounds = array<i64: 16, 128>}, {pipeline_mode = #tpu.pipeline_mode<synchronous>, transform_indices = @transform_1, window_bounds = array<i64: 1, 128>}, {pipeline_mode = #tpu.pipeline_mode<synchronous>, transform_indices = @transform_2, window_bounds = array<i64: 1, 128>}, {pipeline_mode = #tpu.pipeline_mode<synchronous>, transform_indices = @transform_3, window_bounds = array<i64: 128, 256>}, {pipeline_mode = #tpu.pipeline_mode<synchronous>, transform_indices = @transform_4, window_bounds = array<i64: 1, 256>}, {transform_indices = @transform_5, window_bounds = array<i64: 16, 256>}, {transform_indices = @transform_6, window_bounds = array<i64: 16, 128>}]} {
    %c0 = arith.constant 0 : index
    %c0_0 = arith.constant 0 : index
    %0 = vector.load %arg1[%c0, %c0_0] : memref<16x128xf32, #tpu.memory_space<vmem>>, vector<16x128xf32>
    %cst = arith.constant dense<0.000000e+00> : vector<16xf32>
    %1 = vector.multi_reduction <add>, %0, %cst [1] : vector<16x128xf32> to vector<16xf32>
    %2 = vector.shape_cast %1 : vector<16xf32> to vector<16x1xf32>
    %cst_1 = arith.constant 7.812500e-03 : f32
    %3 = vector.broadcast %cst_1 : f32 to vector<16x1xf32>
    %4 = arith.mulf %2, %3 : vector<16x1xf32>
    %5 = vector.broadcast %4 : vector<16x1xf32> to vector<16x128xf32>
    %6 = arith.subf %0, %5 : vector<16x128xf32>
    %7 = arith.mulf %6, %6 : vector<16x128xf32>
    %cst_2 = arith.constant dense<0.000000e+00> : vector<16xf32>
    %8 = vector.multi_reduction <add>, %7, %cst_2 [1] : vector<16x128xf32> to vector<16xf32>
    %9 = vector.shape_cast %8 : vector<16xf32> to vector<16x1xf32>
    %cst_3 = arith.constant 7.812500e-03 : f32
    %10 = vector.broadcast %cst_3 : f32 to vector<16x1xf32>
    %11 = arith.mulf %9, %10 : vector<16x1xf32>
    %cst_4 = arith.constant 9.99999974E-6 : f32
    %12 = vector.broadcast %cst_4 : f32 to vector<16x1xf32>
    %13 = arith.addf %11, %12 : vector<16x1xf32>
    %14 = math.rsqrt %13 : vector<16x1xf32>
    %15 = vector.broadcast %14 : vector<16x1xf32> to vector<16x128xf32>
    %16 = arith.mulf %6, %15 : vector<16x128xf32>
    %c0_5 = arith.constant 0 : index
    %c0_6 = arith.constant 0 : index
    %17 = vector.load %arg2[%c0_5, %c0_6] : memref<1x128xf32, #tpu.memory_space<vmem>>, vector<1x128xf32>
    %18 = vector.broadcast %17 : vector<1x128xf32> to vector<16x128xf32>
    %19 = arith.mulf %16, %18 : vector<16x128xf32>
    %c0_7 = arith.constant 0 : index
    %c0_8 = arith.constant 0 : index
    %20 = vector.load %arg3[%c0_7, %c0_8] : memref<1x128xf32, #tpu.memory_space<vmem>>, vector<1x128xf32>
    %21 = vector.broadcast %20 : vector<1x128xf32> to vector<16x128xf32>
    %22 = arith.addf %19, %21 : vector<16x128xf32>
    %c0_9 = arith.constant 0 : index
    %c0_10 = arith.constant 0 : index
    %23 = vector.load %arg7[%c0_9, %c0_10] : memref<16x128xf32, #tpu.memory_space<vmem>>, vector<16x128xf32>
    tpu.vector_store %arg7[%c0_9, %c0_10], %22 {strides = array<i32>} : memref<16x128xf32, #tpu.memory_space<vmem>>, vector<16x128xf32>,
    %24 = arith.truncf %22 : vector<16x128xf32> to vector<16x128xbf16>
    %c0_11 = arith.constant 0 : index
    %c0_12 = arith.constant 0 : index
    %25 = vector.load %arg4[%c0_11, %c0_12] : memref<128x256xbf16, #tpu.memory_space<vmem>>, vector<128x256xbf16>
    %cst_13 = arith.constant dense<0.000000e+00> : vector<16x256xf32>
    %26 = tpu.matmul %24, %25, %cst_13 {dimension_numbers = #tpu.dot_dimension_numbers<[1], [0], [0], [1], [0, 0, 1, 1], [], []>} : vector<16x128xbf16>, vector<128x256xbf16>, vector<16x256xf32> -> vector<16x256xf32>
    %c0_14 = arith.constant 0 : index
    %c0_15 = arith.constant 0 : index
    %27 = vector.load %arg5[%c0_14, %c0_15] : memref<1x256xf32, #tpu.memory_space<vmem>>, vector<1x256xf32>
    %28 = vector.broadcast %27 : vector<1x256xf32> to vector<16x256xf32>
    %29 = arith.addf %26, %28 : vector<16x256xf32>
    %c0_16 = arith.constant 0 : index
    %c0_17 = arith.constant 0 : index
    %30 = vector.load %arg6[%c0_16, %c0_17] : memref<16x256xf32, #tpu.memory_space<vmem>>, vector<16x256xf32>
    tpu.vector_store %arg6[%c0_16, %c0_17], %29 {strides = array<i32>} : memref<16x256xf32, #tpu.memory_space<vmem>>, vector<16x256xf32>,
    return
  }
  func.func @transform_0(%arg0: i32) -> (i32, i32) {
    %c0_i32 = arith.constant 0 : i32
    %c0_i32_0 = arith.constant 0 : i32
    return %arg0, %c0_i32 : i32, i32
  }
  func.func @transform_1(%arg0: i32) -> (i32, i32) {
    %c0_i32 = arith.constant 0 : i32
    %c0_i32_0 = arith.constant 0 : i32
    %c0_i32_1 = arith.constant 0 : i32
    return %c0_i32, %c0_i32_0 : i32, i32
  }
  func.func @transform_2(%arg0: i32) -> (i32, i32) {
    %c0_i32 = arith.constant 0 : i32
    %c0_i32_0 = arith.constant 0 : i32
    %c0_i32_1 = arith.constant 0 : i32
    return %c0_i32, %c0_i32_0 : i32, i32
  }
  func.func @transform_3(%arg0: i32) -> (i32, i32) {
    %c0_i32 = arith.constant 0 : i32
    %c0_i32_0 = arith.constant 0 : i32
    %c0_i32_1 = arith.constant 0 : i32
    return %c0_i32, %c0_i32_0 : i32, i32
  }
  func.func @transform_4(%arg0: i32) -> (i32, i32) {
    %c0_i32 = arith.constant 0 : i32
    %c0_i32_0 = arith.constant 0 : i32
    %c0_i32_1 = arith.constant 0 : i32
    return %c0_i32, %c0_i32_0 : i32, i32
  }
  func.func @transform_5(%arg0: i32) -> (i32, i32) {
    %c0_i32 = arith.constant 0 : i32
    %c0_i32_0 = arith.constant 0 : i32
    return %arg0, %c0_i32 : i32, i32
  }
  func.func @transform_6(%arg0: i32) -> (i32, i32) {
    %c0_i32 = arith.constant 0 : i32
    %c0_i32_0 = arith.constant 0 : i32
    return %arg0, %c0_i32 : i32, i32
  }
}

</mosaic_0001>

<bundles_post_ra>
// kernel: tpu_custom_call.1
= control target key start
LH: loop header
LB: loop body
LE: loop exit
PB: predicated region body
PF: predicated region fallthrough
CT: control target
= control target key end

     0   :  { %12 = vsyncpa [#allocation3], 0  ;;  %s537_s0 = inlined_call_operand.hbm [shape: f32[16,128], index: 0, kind: input, shape index: {}]   ;;  %s538_s1 = inlined_call_operand.vmem [shape: f32[1,128], index: 1, kind: input, shape index: {}]   ;;  %s539_s2 = inlined_call_operand.hbm [shape: f32[1,128], index: 2, kind: input, shape index: {}]   ;;  %s540_s3 = inlined_call_operand.hbm [shape: bf16[128,256], index: 3, kind: input, shape index: {}]   ;;  %s541_s4 = inlined_call_operand.vmem [shape: f32[1,256], index: 4, kind: input, shape index: {}]   ;;  %s542_s5 = inlined_call_operand.hbm [shape: f32[16,256], index: 5, kind: output, shape index: {0}]   ;;  %s543_s6 = inlined_call_operand.hbm [shape: f32[16,128], index: 6, kind: output, shape index: {1}]  }
   0x1   :  { %13 = vsyncpa [#allocation6], 0 }
   0x2   :  { %14 = vsyncpa [#allocation4], 0 }
   0x3   :  { %15 = vsyncpa [#allocation10], 0  ;;  %s462_s21 = smov [#allocation5]   ;;  %s463_s23 = smov [#allocation2]  }
   0x4   :  { %s36_s22 = sshll.u32 %s462_s21, 4  ;;  %s21_s24 = sshll.u32 %s463_s23, 4  ;;  %s37_s22 = int_to_ptr.vmem [resolvable:$true] %s36_s22  ;;  %s22_s24 = int_to_ptr.vmem [resolvable:$true] %s21_s24 }
   0x5   :  { %s362_s25 = scalar_lea.vmem %s37_s22, 16  ;;  %s366_s26 = scalar_lea.vmem %s37_s22, 32 }
   0x6   :  { %p363_p0 = scmp.ne.s32.totalorder %s37_s22, %s362_s25  ;;  %p367_p1 = scmp.lt.s32.totalorder %s37_s22, %s37_s22 }
   0x7   :  { %p368_p2 = scmp.lt.s32.totalorder %s366_s26, %s362_s25 }
   0x9   :  { %p369_p3 = por %p368_p2, %p367_p1 }
   0xb   :  { %p370_p4 = pnand %p369_p3, %p363_p0 }
   0xd   :  { %373 = shalt.err (!%p370_p4)
}
   0xe   :  { %39 = dma.hbm_to_vmem [thread:$0]  %s539_s2, 16, %s37_s22, [#allocation6]  }
   0xf   :  { %s382_s29 = scalar_lea.vmem %s22_s24, 256  ;;  %p387_p6 = scmp.lt.s32.totalorder %s22_s24, %s22_s24 }
  0x10   :  { %p383_p5 = scmp.ne.s32.totalorder %s22_s24, %s382_s29  ;;  %p388_p7 = scmp.lt.s32.totalorder %s382_s29, %s382_s29 }
  0x12   :  { %p389_p8 = por %p388_p7, %p387_p6 }
  0x14   :  { %p390_p9 = pnand %p389_p8, %p383_p5 }
  0x16   :  { %393 = shalt.err (!%p390_p9)
}
  0x17   :  { %s464_s30 = smov 128   ;;  %s465_s7 = smov 8  }
  0x18   :  { %27 = dma.hbm_to_vmem [thread:$0]  %s537_s0, 256, %s22_s24, [#allocation3], %s464_s30, %s464_s30, %s465_s7  }
  0x19   :  { %s466_s10 = smov [#allocation7]  }
  0x1a   :  { %s45_s11 = sshll.u32 %s466_s10, 4  ;;  %s46_s11 = int_to_ptr.vmem [resolvable:$true] %s45_s11 }
  0x1b   :  { %s402_s2 = scalar_lea.vmem %s46_s11, 2048  ;;  %p407_p11 = scmp.lt.s32.totalorder %s46_s11, %s46_s11 }
  0x1c   :  { %p403_p10 = scmp.ne.s32.totalorder %s46_s11, %s402_s2  ;;  %p408_p12 = scmp.lt.s32.totalorder %s402_s2, %s402_s2 }
  0x1e   :  { %p409_p13 = por %p408_p12, %p407_p11 }
  0x20   :  { %p410_p0 = pnand %p409_p13, %p403_p10 }
  0x22   :  { %413 = shalt.err (!%p410_p0)
}
  0x23   :  { %51 = dma.hbm_to_vmem [thread:$0]  %s540_s3, 2048, %s46_s11, [#allocation6], %s464_s30, %s464_s30, %s465_s7  }
  0x24   :  { %454 = dma.done.wait [#allocation3], 256  }
  0x25   :  { %455 = vsyncadd [#allocation3], 4294967040 }
  0x26   :  { %456 = dma.done.wait [#allocation6], 2064  }
  0x27   :  { %457 = vsyncadd [#allocation6], 4294965232  ;;  %v64_v0 = vld [vmem:[#allocation2] sm:$0xff]  ;;  %v65_v1 = vld [vmem:[#allocation2 + $0x8] sm:$0xff]  ;;  %v467_v21 = vmov 0   ;;  %s468_s14 = smov [#allocation9]  }
  0x28   :  { %66 = vadd.xlane.f32.xlu0 %v64_v0  ;;  %v326_v2 = vld [vmem:[#allocation7 + $0x74] ss:$8 sps:$4 sm:$0xff]   ;;  %v328_v3 = vld [vmem:[#allocation7 + $0x70] ss:$8 sps:$4 sm:$0xff]   ;;  %v329_v12 = vld [vmem:[#allocation7 + $0x64] ss:$8 sps:$4 sm:$0xff]   ;;  %249 = vmatprep.mubr.bf16.mxu0 %v467_v21 }
  0x29   :  { %217 = vmatprep.subr.bf16.mxu0 %v326_v2  ;;  %v331_v13 = vld [vmem:[#allocation7 + $0x60] ss:$8 sps:$4 sm:$0xff]   ;;  %v332_v14 = vld [vmem:[#allocation7 + $0x54] ss:$8 sps:$4 sm:$0xff]   ;;  %v334_v15 = vld [vmem:[#allocation7 + $0x50] ss:$8 sps:$4 sm:$0xff]  }
  0x2a   :  { %218 = vmatpush1.bf16.msra.mxu0 %v328_v3  ;;  %v335_v16 = vld [vmem:[#allocation7 + $0x44] ss:$8 sps:$4 sm:$0xff]   ;;  %v337_v17 = vld [vmem:[#allocation7 + $0x40] ss:$8 sps:$4 sm:$0xff]   ;;  %v338_v18 = vld [vmem:[#allocation7 + $0x34] ss:$8 sps:$4 sm:$0xff]  }
  0x2b   :  { %219 = vmatprep.subr.bf16.mxu0 %v329_v12  ;;  %v340_v19 = vld [vmem:[#allocation7 + $0x30] ss:$8 sps:$4 sm:$0xff]   ;;  %v341_v20 = vld [vmem:[#allocation7 + $0x24] ss:$8 sps:$4 sm:$0xff]   ;;  %v343_v22 = vld [vmem:[#allocation7 + $0x20] ss:$8 sps:$4 sm:$0xff]  }
  0x2c   :  { %68 = vadd.xlane.f32.xlu0 %v65_v1  ;;  %v344_v23 = vld [vmem:[#allocation7 + $0x14] ss:$8 sps:$4 sm:$0xff]   ;;  %v346_v24 = vld [vmem:[#allocation7 + $0x10] ss:$8 sps:$4 sm:$0xff]   ;;  %v347_v25 = vld [vmem:[#allocation7 + $0x4] ss:$8 sps:$4 sm:$0xff]  }
  0x2d   :  { %v349_v26 = vld [vmem:[#allocation7] ss:$8 sps:$4 sm:$0xff]   ;;  %v298_v34 = vld [vmem:[%s538_s1] ss:$0 sm:$0xff]  ;;  %v299_v36 = vld [vmem:[#allocation5] ss:$0 sm:$0xff] }
  0x2e   :  { %220 = vmatpush1.bf16.msra.mxu0 %v331_v13  ;;  %s281_s15 = sshll.u32 %s468_s14, 4  ;;  %s282_s15 = int_to_ptr.vmem [resolvable:$true] %s281_s15 }
  0x2f   :  { %221 = vmatprep.subr.bf16.mxu0 %v332_v14  ;;  %s414_s16 = scalar_lea.vmem %s282_s15, 256  ;;  %p419_p2 = scmp.lt.s32.totalorder %s282_s15, %s282_s15 }
  0x30   :  { %p415_p1 = scmp.ne.s32.totalorder %s282_s15, %s414_s16  ;;  %p420_p3 = scmp.lt.s32.totalorder %s414_s16, %s414_s16 }
  0x32   :  { %222 = vmatpush1.bf16.msra.mxu0 %v334_v15  ;;  %p421_p4 = por %p420_p3, %p419_p2 }
  0x33   :  { %223 = vmatprep.subr.bf16.mxu0 %v335_v16 }
  0x34   :  { %p422_p5 = pnand %p421_p4, %p415_p1 }
  0x36   :  { %224 = vmatpush1.bf16.msra.mxu0 %v337_v17 }
  0x37   :  { %225 = vmatprep.subr.bf16.mxu0 %v338_v18 }
  0x3a   :  { %226 = vmatpush1.bf16.msra.mxu0 %v340_v19 }
  0x3b   :  { %227 = vmatprep.subr.bf16.mxu0 %v341_v20 }
  0x3e   :  { %228 = vmatpush1.bf16.msra.mxu0 %v343_v22 }
  0x3f   :  { %229 = vmatprep.subr.bf16.mxu0 %v344_v23 }
  0x42   :  { %230 = vmatpush1.bf16.msra.mxu0 %v346_v24 }
  0x43   :  { %231 = vmatprep.subr.bf16.mxu0 %v347_v25 }
  0x46   :  { %232 = vmatpush1.bf16.msra.mxu0 %v349_v26 }
  0xb1   :  { %v67_v4 = vpop.xlane.xlu0 %66 }
  0xb2   :  { %v70_v5 = vmul.f32 0.0078125, %v67_v4 }
  0xb4   :  { %v72_v6 = vsub.f32 %v64_v0, %v70_v5 }
  0xb5   :  { %v69_v7 = vpop.xlane.xlu0 %68 }
  0xb6   :  { %v71_v8 = vmul.f32 0.0078125, %v69_v7  ;;  %v74_v9 = vmul.f32 %v72_v6, %v72_v6 }
  0xb8   :  { %v73_v10 = vsub.f32 %v65_v1, %v71_v8  ;;  %76 = vadd.xlane.f32.xlu1 %v74_v9 }
  0xba   :  { %v75_v11 = vmul.f32 %v73_v10, %v73_v10 }
  0xbc   :  { %78 = vadd.xlane.f32.xlu1 %v75_v11 }
 0x141   :  { %v77_v27 = vpop.xlane.xlu1 %76 }
 0x142   :  { %v80_v28 = vmul.f32 0.0078125, %v77_v27 }
 0x144   :  { %v82_v29 = vadd.f32 1e-05, %v80_v28 }
 0x145   :  { %v79_v30 = vpop.xlane.xlu1 %78 }
 0x146   :  { %350 = vrsqrt.f32 %v82_v29  ;;  %v81_v31 = vmul.f32 0.0078125, %v79_v30 }
 0x148   :  { %v83_v32 = vadd.f32 1e-05, %v81_v31 }
 0x14a   :  { %352 = vrsqrt.f32 %v83_v32 }
 0x153   :  { %v351_v33 = vpop.eup %350 }
 0x154   :  { %v86_v35 = vmul.f32 %v351_v33, %v72_v6 }
 0x156   :  { %v95_v37 = vmul.f32 %v298_v34, %v86_v35 }
 0x157   :  { %v353_v38 = vpop.eup %352 }
 0x158   :  { %v87_v39 = vmul.f32 %v353_v38, %v73_v10  ;;  %v104_v40 = vadd.f32 %v299_v36, %v95_v37 }
 0x15a   :  { %v96_v41 = vmul.f32 %v298_v34, %v87_v39  ;;  %106 = vst [vmem:[#allocation9] sm:$0xff] %v104_v40 }
 0x15c   :  { %v105_v42 = vadd.f32 %v299_v36, %v96_v41 }
 0x15e   :  { %v108_v43 = vpack.c.bf16 %v105_v42, %v104_v40  ;;  %107 = vst [vmem:[#allocation9 + $0x8] sm:$0xff] %v105_v42 }
 0x160   :  { %250 = vmatmul.mubr.bf16.vlgmr.msra.gmra.mxu0 %v108_v43 }
 0x161   :  { %425 = shalt.err (!%p422_p5)
}
 0x162   :  { %287 = dma.vmem_to_hbm [thread:$0]  %s282_s15, 256, %s543_s6, [#allocation10], %s464_s30, %s464_s30, %s465_s7   ;;  %v127_v44 = vlaneseq }
 0x163   :  { %v125_v47 = vld [vmem:[%s541_s4] sm:$0x3]  ;;  %s469_s20 = smov [#allocation8]  }
 0x164   :  { %v128_v45 = vshrl.u32 %v127_v44, 7  ;;  %s269_s21 = sshll.u32 %s469_s20, 4  ;;  %s270_s21 = int_to_ptr.vmem [resolvable:$true] %s269_s21 }
 0x165   :  { %s434_s6 = scalar_lea.vmem %s270_s21, 512  ;;  %p439_p7 = scmp.lt.s32.totalorder %s270_s21, %s270_s21 }
 0x166   :  { %v129_v46 = vsub.s32 0, %v128_v45  ;;  %v133_v48 = vsub.s32 1, %v128_v45  ;;  %p435_p6 = scmp.ne.s32.totalorder %s270_s21, %s434_s6  ;;  %p440_p8 = scmp.lt.s32.totalorder %s434_s6, %s434_s6 }
 0x168   :  { %v130_v49 = vrot.slane %v125_v47, %v129_v46  ;;  %v134_v50 = vrot.slane %v125_v47, %v133_v48  ;;  %p441_p9 = por %p440_p8, %p439_p7 }
 0x16a   :  { %p442_p10 = pnand %p441_p9, %p435_p6 }
 0x220   :  { %v251_v51 = vpop.f32.mrf.mxu0 }
 0x221   :  { %v252_v52 = vadd.f32 %v251_v51, %v130_v49 }
 0x222   :  { %v253_v53 = vpop.f32.mrf.mxu0 }
 0x223   :  { %260 = vst [vmem:[#allocation8] sm:$0xff] %v252_v52  ;;  %v254_v54 = vadd.f32 %v253_v53, %v134_v50 }
 0x224   :  { %v255_v55 = vpop.f32.mrf.mxu0 }
 0x225   :  { %261 = vst [vmem:[#allocation8 + $0x8] sm:$0xff] %v254_v54  ;;  %v256_v56 = vadd.f32 %v255_v55, %v130_v49 }
 0x226   :  { %v257_v57 = vpop.f32.mrf.mxu0 }
 0x227   :  { %262 = vst [vmem:[#allocation8 + $0x10] sm:$0xff] %v256_v56  ;;  %v258_v58 = vadd.f32 %v257_v57, %v134_v50 }
 0x229   :  { %263 = vst [vmem:[#allocation8 + $0x18] sm:$0xff] %v258_v58 }
 0x22a   :  { %445 = shalt.err (!%p442_p10)
}
 0x22b   :  { %s470_s4 = smov 256   ;;  %s471_s22 = smov 16  }
 0x22c   :  { %275 = dma.vmem_to_hbm [thread:$0]  %s270_s21, 512, %s542_s5, [#allocation4], %s470_s4, %s470_s4, %s471_s22  }
 0x22d   :  { %458 = dma.done.wait [#allocation4], 512  }
 0x22e   :  { %459 = vsyncadd [#allocation4], 4294966784 }
 0x22f   :  { %460 = dma.done.wait [#allocation10], 256  }
 0x230   :  { %461 = vsyncadd [#allocation10], 4294967040 }
 0x231   :  { %294 = vsyncpa [#allocation3], 1 }
 0x232   :  { %295 = vsyncpa [#allocation6], 1 }
 0x233   :  { %296 = vsyncpa [#allocation4], 1 }
 0x234   :  { %297 = vsyncpa [#allocation10], 1 }

// kernel: tpu_custom_call.1
= control target key start
LH: loop header
LB: loop body
LE: loop exit
PB: predicated region body
PF: predicated region fallthrough
CT: control target
= control target key end

     0   :  { %12 = vsyncpa [#allocation3], 0  ;;  %s537_s0 = inlined_call_operand.hbm [shape: f32[16,128], index: 0, kind: input, shape index: {}]   ;;  %s538_s1 = inlined_call_operand.vmem [shape: f32[1,128], index: 1, kind: input, shape index: {}]   ;;  %s539_s2 = inlined_call_operand.hbm [shape: f32[1,128], index: 2, kind: input, shape index: {}]   ;;  %s540_s3 = inlined_call_operand.hbm [shape: bf16[128,256], index: 3, kind: input, shape index: {}]   ;;  %s541_s4 = inlined_call_operand.vmem [shape: f32[1,256], index: 4, kind: input, shape index: {}]   ;;  %s542_s5 = inlined_call_operand.hbm [shape: f32[16,256], index: 5, kind: output, shape index: {0}]   ;;  %s543_s6 = inlined_call_operand.hbm [shape: f32[16,128], index: 6, kind: output, shape index: {1}]  }
   0x1   :  { %13 = vsyncpa [#allocation6], 0 }
   0x2   :  { %14 = vsyncpa [#allocation4], 0 }
   0x3   :  { %15 = vsyncpa [#allocation10], 0  ;;  %s462_s21 = smov [#allocation5]   ;;  %s463_s23 = smov [#allocation2]  }
   0x4   :  { %s36_s22 = sshll.u32 %s462_s21, 4  ;;  %s21_s24 = sshll.u32 %s463_s23, 4  ;;  %s37_s22 = int_to_ptr.vmem [resolvable:$true] %s36_s22  ;;  %s22_s24 = int_to_ptr.vmem [resolvable:$true] %s21_s24 }
   0x5   :  { %s362_s25 = scalar_lea.vmem %s37_s22, 16  ;;  %s366_s26 = scalar_lea.vmem %s37_s22, 32 }
   0x6   :  { %p363_p0 = scmp.ne.s32.totalorder %s37_s22, %s362_s25  ;;  %p367_p1 = scmp.lt.s32.totalorder %s37_s22, %s37_s22 }
   0x7   :  { %p368_p2 = scmp.lt.s32.totalorder %s366_s26, %s362_s25 }
   0x9   :  { %p369_p3 = por %p368_p2, %p367_p1 }
   0xb   :  { %p370_p4 = pnand %p369_p3, %p363_p0 }
   0xd   :  { %373 = shalt.err (!%p370_p4)
}
   0xe   :  { %39 = dma.hbm_to_vmem [thread:$0]  %s539_s2, 16, %s37_s22, [#allocation6]  }
   0xf   :  { %s382_s29 = scalar_lea.vmem %s22_s24, 256  ;;  %p387_p6 = scmp.lt.s32.totalorder %s22_s24, %s22_s24 }
  0x10   :  { %p383_p5 = scmp.ne.s32.totalorder %s22_s24, %s382_s29  ;;  %p388_p7 = scmp.lt.s32.totalorder %s382_s29, %s382_s29 }
  0x12   :  { %p389_p8 = por %p388_p7, %p387_p6 }
  0x14   :  { %p390_p9 = pnand %p389_p8, %p383_p5 }
  0x16   :  { %393 = shalt.err (!%p390_p9)
}
  0x17   :  { %s464_s30 = smov 128   ;;  %s465_s7 = smov 8  }
  0x18   :  { %27 = dma.hbm_to_vmem [thread:$0]  %s537_s0, 256, %s22_s24, [#allocation3], %s464_s30, %s464_s30, %s465_s7  }
  0x19   :  { %s466_s10 = smov [#allocation7]  }
  0x1a   :  { %s45_s11 = sshll.u32 %s466_s10, 4  ;;  %s46_s11 = int_to_ptr.vmem [resolvable:$true] %s45_s11 }
  0x1b   :  { %s402_s2 = scalar_lea.vmem %s46_s11, 2048  ;;  %p407_p11 = scmp.lt.s32.totalorder %s46_s11, %s46_s11 }
  0x1c   :  { %p403_p10 = scmp.ne.s32.totalorder %s46_s11, %s402_s2  ;;  %p408_p12 = scmp.lt.s32.totalorder %s402_s2, %s402_s2 }
  0x1e   :  { %p409_p13 = por %p408_p12, %p407_p11 }
  0x20   :  { %p410_p0 = pnand %p409_p13, %p403_p10 }
  0x22   :  { %413 = shalt.err (!%p410_p0)
}
  0x23   :  { %51 = dma.hbm_to_vmem [thread:$0]  %s540_s3, 2048, %s46_s11, [#allocation6], %s464_s30, %s464_s30, %s465_s7  }
  0x24   :  { %454 = dma.done.wait [#allocation3], 256  }
  0x25   :  { %455 = vsyncadd [#allocation3], 4294967040 }
  0x26   :  { %456 = dma.done.wait [#allocation6], 2064  }
  0x27   :  { %457 = vsyncadd [#allocation6], 4294965232  ;;  %v64_v0 = vld [vmem:[#allocation2] sm:$0xff]  ;;  %v65_v1 = vld [vmem:[#allocation2 + $0x8] sm:$0xff]  ;;  %v467_v21 = vmov 0   ;;  %s468_s14 = smov [#allocation9]  }
  0x28   :  { %66 = vadd.xlane.f32.xlu0 %v64_v0  ;;  %v326_v2 = vld [vmem:[#allocation7 + $0x74] ss:$8 sps:$4 sm:$0xff]   ;;  %v328_v3 = vld [vmem:[#allocation7 + $0x70] ss:$8 sps:$4 sm:$0xff]   ;;  %v329_v12 = vld [vmem:[#allocation7 + $0x64] ss:$8 sps:$4 sm:$0xff]   ;;  %249 = vmatprep.mubr.bf16.mxu0 %v467_v21 }
  0x29   :  { %217 = vmatprep.subr.bf16.mxu0 %v326_v2  ;;  %v331_v13 = vld [vmem:[#allocation7 + $0x60] ss:$8 sps:$4 sm:$0xff]   ;;  %v332_v14 = vld [vmem:[#allocation7 + $0x54] ss:$8 sps:$4 sm:$0xff]   ;;  %v334_v15 = vld [vmem:[#allocation7 + $0x50] ss:$8 sps:$4 sm:$0xff]  }
  0x2a   :  { %218 = vmatpush1.bf16.msra.mxu0 %v328_v3  ;;  %v335_v16 = vld [vmem:[#allocation7 + $0x44] ss:$8 sps:$4 sm:$0xff]   ;;  %v337_v17 = vld [vmem:[#allocation7 + $0x40] ss:$8 sps:$4 sm:$0xff]   ;;  %v338_v18 = vld [vmem:[#allocation7 + $0x34] ss:$8 sps:$4 sm:$0xff]  }
  0x2b   :  { %219 = vmatprep.subr.bf16.mxu0 %v329_v12  ;;  %v340_v19 = vld [vmem:[#allocation7 + $0x30] ss:$8 sps:$4 sm:$0xff]   ;;  %v341_v20 = vld [vmem:[#allocation7 + $0x24] ss:$8 sps:$4 sm:$0xff]   ;;  %v343_v22 = vld [vmem:[#allocation7 + $0x20] ss:$8 sps:$4 sm:$0xff]  }
  0x2c   :  { %68 = vadd.xlane.f32.xlu0 %v65_v1  ;;  %v344_v23 = vld [vmem:[#allocation7 + $0x14] ss:$8 sps:$4 sm:$0xff]   ;;  %v346_v24 = vld [vmem:[#allocation7 + $0x10] ss:$8 sps:$4 sm:$0xff]   ;;  %v347_v25 = vld [vmem:[#allocation7 + $0x4] ss:$8 sps:$4 sm:$0xff]  }
  0x2d   :  { %v349_v26 = vld [vmem:[#allocation7] ss:$8 sps:$4 sm:$0xff]   ;;  %v298_v34 = vld [vmem:[%s538_s1] ss:$0 sm:$0xff]  ;;  %v299_v36 = vld [vmem:[#allocation5] ss:$0 sm:$0xff] }
  0x2e   :  { %220 = vmatpush1.bf16.msra.mxu0 %v331_v13  ;;  %s281_s15 = sshll.u32 %s468_s14, 4  ;;  %s282_s15 = int_to_ptr.vmem [resolvable:$true] %s281_s15 }
  0x2f   :  { %221 = vmatprep.subr.bf16.mxu0 %v332_v14  ;;  %s414_s16 = scalar_lea.vmem %s282_s15, 256  ;;  %p419_p2 = scmp.lt.s32.totalorder %s282_s15, %s282_s15 }
  0x30   :  { %p415_p1 = scmp.ne.s32.totalorder %s282_s15, %s414_s16  ;;  %p420_p3 = scmp.lt.s32.totalorder %s414_s16, %s414_s16 }
  0x32   :  { %222 = vmatpush1.bf16.msra.mxu0 %v334_v15  ;;  %p421_p4 = por %p420_p3, %p419_p2 }
  0x33   :  { %223 = vmatprep.subr.bf16.mxu0 %v335_v16 }
  0x34   :  { %p422_p5 = pnand %p421_p4, %p415_p1 }
  0x36   :  { %224 = vmatpush1.bf16.msra.mxu0 %v337_v17 }
  0x37   :  { %225 = vmatprep.subr.bf16.mxu0 %v338_v18 }
  0x3a   :  { %226 = vmatpush1.bf16.msra.mxu0 %v340_v19 }
  0x3b   :  { %227 = vmatprep.subr.bf16.mxu0 %v341_v20 }
  0x3e   :  { %228 = vmatpush1.bf16.msra.mxu0 %v343_v22 }
  0x3f   :  { %229 = vmatprep.subr.bf16.mxu0 %v344_v23 }
  0x42   :  { %230 = vmatpush1.bf16.msra.mxu0 %v346_v24 }
  0x43   :  { %231 = vmatprep.subr.bf16.mxu0 %v347_v25 }
  0x46   :  { %232 = vmatpush1.bf16.msra.mxu0 %v349_v26 }
  0xb1   :  { %v67_v4 = vpop.xlane.xlu0 %66 }
  0xb2   :  { %v70_v5 = vmul.f32 0.0078125, %v67_v4 }
  0xb4   :  { %v72_v6 = vsub.f32 %v64_v0, %v70_v5 }
  0xb5   :  { %v69_v7 = vpop.xlane.xlu0 %68 }
  0xb6   :  { %v71_v8 = vmul.f32 0.0078125, %v69_v7  ;;  %v74_v9 = vmul.f32 %v72_v6, %v72_v6 }
  0xb8   :  { %v73_v10 = vsub.f32 %v65_v1, %v71_v8  ;;  %76 = vadd.xlane.f32.xlu1 %v74_v9 }
  0xba   :  { %v75_v11 = vmul.f32 %v73_v10, %v73_v10 }
  0xbc   :  { %78 = vadd.xlane.f32.xlu1 %v75_v11 }
 0x141   :  { %v77_v27 = vpop.xlane.xlu1 %76 }
 0x142   :  { %v80_v28 = vmul.f32 0.0078125, %v77_v27 }
 0x144   :  { %v82_v29 = vadd.f32 1e-05, %v80_v28 }
 0x145   :  { %v79_v30 = vpop.xlane.xlu1 %78 }
 0x146   :  { %350 = vrsqrt.f32 %v82_v29  ;;  %v81_v31 = vmul.f32 0.0078125, %v79_v30 }
 0x148   :  { %v83_v32 = vadd.f32 1e-05, %v81_v31 }
 0x14a   :  { %352 = vrsqrt.f32 %v83_v32 }
 0x153   :  { %v351_v33 = vpop.eup %350 }
 0x154   :  { %v86_v35 = vmul.f32 %v351_v33, %v72_v6 }
 0x156   :  { %v95_v37 = vmul.f32 %v298_v34, %v86_v35 }
 0x157   :  { %v353_v38 = vpop.eup %352 }
 0x158   :  { %v87_v39 = vmul.f32 %v353_v38, %v73_v10  ;;  %v104_v40 = vadd.f32 %v299_v36, %v95_v37 }
 0x15a   :  { %v96_v41 = vmul.f32 %v298_v34, %v87_v39  ;;  %106 = vst [vmem:[#allocation9] sm:$0xff] %v104_v40 }
 0x15c   :  { %v105_v42 = vadd.f32 %v299_v36, %v96_v41 }
 0x15e   :  { %v108_v43 = vpack.c.bf16 %v105_v42, %v104_v40  ;;  %107 = vst [vmem:[#allocation9 + $0x8] sm:$0xff] %v105_v42 }
 0x160   :  { %250 = vmatmul.mubr.bf16.vlgmr.msra.gmra.mxu0 %v108_v43 }
 0x161   :  { %425 = shalt.err (!%p422_p5)
}
 0x162   :  { %287 = dma.vmem_to_hbm [thread:$0]  %s282_s15, 256, %s543_s6, [#allocation10], %s464_s30, %s464_s30, %s465_s7   ;;  %v127_v44 = vlaneseq }
 0x163   :  { %v125_v47 = vld [vmem:[%s541_s4] sm:$0x3]  ;;  %s469_s20 = smov [#allocation8]  }
 0x164   :  { %v128_v45 = vshrl.u32 %v127_v44, 7  ;;  %s269_s21 = sshll.u32 %s469_s20, 4  ;;  %s270_s21 = int_to_ptr.vmem [resolvable:$true] %s269_s21 }
 0x165   :  { %s434_s6 = scalar_lea.vmem %s270_s21, 512  ;;  %p439_p7 = scmp.lt.s32.totalorder %s270_s21, %s270_s21 }
 0x166   :  { %v129_v46 = vsub.s32 0, %v128_v45  ;;  %v133_v48 = vsub.s32 1, %v128_v45  ;;  %p435_p6 = scmp.ne.s32.totalorder %s270_s21, %s434_s6  ;;  %p440_p8 = scmp.lt.s32.totalorder %s434_s6, %s434_s6 }
 0x168   :  { %v130_v49 = vrot.slane %v125_v47, %v129_v46  ;;  %v134_v50 = vrot.slane %v125_v47, %v133_v48  ;;  %p441_p9 = por %p440_p8, %p439_p7 }
 0x16a   :  { %p442_p10 = pnand %p441_p9, %p435_p6 }
 0x220   :  { %v251_v51 = vpop.f32.mrf.mxu0 }
 0x221   :  { %v252_v52 = vadd.f32 %v251_v51, %v130_v49 }
 0x222   :  { %v253_v53 = vpop.f32.mrf.mxu0 }
 0x223   :  { %260 = vst [vmem:[#allocation8] sm:$0xff] %v252_v52  ;;  %v254_v54 = vadd.f32 %v253_v53, %v134_v50 }
 0x224   :  { %v255_v55 = vpop.f32.mrf.mxu0 }
 0x225   :  { %261 = vst [vmem:[#allocation8 + $0x8] sm:$0xff] %v254_v54  ;;  %v256_v56 = vadd.f32 %v255_v55, %v130_v49 }
 0x226   :  { %v257_v57 = vpop.f32.mrf.mxu0 }
 0x227   :  { %262 = vst [vmem:[#allocation8 + $0x10] sm:$0xff] %v256_v56  ;;  %v258_v58 = vadd.f32 %v257_v57, %v134_v50 }
 0x229   :  { %263 = vst [vmem:[#allocation8 + $0x18] sm:$0xff] %v258_v58 }
 0x22a   :  { %445 = shalt.err (!%p442_p10)
}
 0x22b   :  { %s470_s4 = smov 256   ;;  %s471_s22 = smov 16  }
 0x22c   :  { %275 = dma.vmem_to_hbm [thread:$0]  %s270_s21, 512, %s542_s5, [#allocation4], %s470_s4, %s470_s4, %s471_s22  }
 0x22d   :  { %458 = dma.done.wait [#allocation4], 512  }
 0x22e   :  { %459 = vsyncadd [#allocation4], 4294966784 }
 0x22f   :  { %460 = dma.done.wait [#allocation10], 256  }
 0x230   :  { %461 = vsyncadd [#allocation10], 4294967040 }
 0x231   :  { %294 = vsyncpa [#allocation3], 1 }
 0x232   :  { %295 = vsyncpa [#allocation6], 1 }
 0x233   :  { %296 = vsyncpa [#allocation4], 1 }
 0x234   :  { %297 = vsyncpa [#allocation10], 1 }

</bundles_post_ra>
